<compile_context>
chip_gen: v7x
topology: tpu7x:2x2x1
jax: 0.10.0
libtpu: 0.0.40
codegen_flags: <defaults>
</compile_context>

<pallas_src>
import jax
import jax.numpy as jnp
from jax.experimental import pallas as pl
from jax.experimental.pallas import tpu as pltpu


def embracenet_multimodal_kernel(
    p0_ref,                        # SMEM (1,) f32: P(select FFNN modality)
    xf_ref, xc_ref,                # [B, F_f], [B, F_c]  f32 activations
    u_ref,                         # [B, E] f32 uniforms for modality sampling
    w_pre_f_ref, b_pre_f_ref,      # FFNN_pre stand-in   (w: bf16, b: f32)
    w_pre_c_ref, b_pre_c_ref,      # CNN_pre stand-in
    w_d0_ref, b_d0_ref,            # docking_0 (FFNN modality)
    w_d1_ref, b_d1_ref,            # docking_1 (CNN modality)
    w_post1_ref, b_post1_ref,      # post Linear -> ReLU
    w_post2_ref, b_post2_ref,      # post Linear -> logits (lane-padded to 128)
    out_ref,                       # [B, N_pad] f32
):
    f32 = jnp.float32
    bf16 = jnp.bfloat16

    # ---- pre nets (stand-ins for FFNN_pre / CNN_pre) ----
    # bf16 weights at the MXU, f32 accumulate, f32 elementwise (v5e-friendly).
    h_f = jnp.dot(xf_ref[...].astype(bf16), w_pre_f_ref[...],
                  preferred_element_type=f32)
    h_f = jnp.maximum(h_f + b_pre_f_ref[...], 0.0)
    h_c = jnp.dot(xc_ref[...].astype(bf16), w_pre_c_ref[...],
                  preferred_element_type=f32)
    h_c = jnp.maximum(h_c + b_pre_c_ref[...], 0.0)

    # ---- EmbraceNet docking layers: Linear + ReLU -> [B, E] each ----
    d0 = jnp.maximum(
        jnp.dot(h_f.astype(bf16), w_d0_ref[...], preferred_element_type=f32)
        + b_d0_ref[...], 0.0)
    d1 = jnp.maximum(
        jnp.dot(h_c.astype(bf16), w_d1_ref[...], preferred_element_type=f32)
        + b_d1_ref[...], 0.0)

    # ---- multinomial(num_samples=E, replacement=True) over 2 modalities ----
    # p0 is the (availability-normalized) probability of modality 0; with two
    # modalities, one_hot-gating + sum == per-element select between d0 / d1.
    p0 = p0_ref[0]
    pick_modality0 = u_ref[...] < p0                         # [B, E] bool
    embraced = jnp.where(pick_modality0, d0, d1)             # [B, E] f32

    # ---- post head: Linear -> ReLU -> Dropout(eval, no-op) -> Linear ----
    h = jnp.maximum(
        jnp.dot(embraced.astype(bf16), w_post1_ref[...],
                preferred_element_type=f32) + b_post1_ref[...], 0.0)
    logits = jnp.dot(h.astype(bf16), w_post2_ref[...],
                     preferred_element_type=f32) + b_post2_ref[...]
    out_ref[...] = logits.astype(out_ref.dtype)


def _pad_to(n, mult):
    return ((n + mult - 1) // mult) * mult


def embracenet_multimodal(x_ffnn, x_cnn, params, rng_key):
    """Eval-mode forward (is_training=False, availabilities=None)."""
    B = x_ffnn.shape[0]
    x_cnn_flat = x_cnn.reshape(B, -1).astype(jnp.float32)
    x_ffnn = x_ffnn.astype(jnp.float32)

    E = params["w_d0"].shape[1]
    n_classes = params["w_post2"].shape[1]

    # Pad batch to a multiple of 8 (f32 sublane) for clean tiling.
    B_pad = max(8, _pad_to(B, 8))
    if B_pad != B:
        x_ffnn = jnp.pad(x_ffnn, ((0, B_pad - B), (0, 0)))
        x_cnn_flat = jnp.pad(x_cnn_flat, ((0, B_pad - B), (0, 0)))

    # Lane-dense output: pad final Linear from n_classes -> multiple of 128.
    N_pad = max(128, _pad_to(n_classes, 128))
    w_post2 = jnp.pad(params["w_post2"], ((0, 0), (0, N_pad - n_classes)))
    b_post2 = jnp.pad(params["b_post2"], ((0, 0), (0, N_pad - n_classes)))

    # Scalar selection probability for modality 0 (availabilities = ones).
    sel = params["selection_probabilities"].astype(jnp.float32)
    p0 = (sel[0] / (sel[0] + sel[1])).reshape(1)

    # Per-element uniforms for the multinomial modality sampling.
    u = jax.random.uniform(rng_key, (B_pad, E), jnp.float32)

    bf16 = jnp.bfloat16
    f32 = jnp.float32

    vmem = pl.BlockSpec(memory_space=pltpu.MemorySpace.VMEM)
    smem = pl.BlockSpec(memory_space=pltpu.MemorySpace.SMEM)

    args = (
        p0,
        x_ffnn, x_cnn_flat, u,
        params["w_pre_f"].astype(bf16), params["b_pre_f"].astype(f32),
        params["w_pre_c"].astype(bf16), params["b_pre_c"].astype(f32),
        params["w_d0"].astype(bf16), params["b_d0"].astype(f32),
        params["w_d1"].astype(bf16), params["b_d1"].astype(f32),
        params["w_post1"].astype(bf16), params["b_post1"].astype(f32),
        w_post2.astype(bf16), b_post2.astype(f32),
    )
    in_specs = [smem] + [vmem] * (len(args) - 1)

    out = pl.pallas_call(
        embracenet_multimodal_kernel,
        out_shape=jax.ShapeDtypeStruct((B_pad, N_pad), jnp.float32),
        in_specs=in_specs,
        out_specs=vmem,
    )(*args)
    return out[:B, :n_classes]


def _linear_init(key, fan_in, fan_out):
    """PyTorch nn.Linear default init: U(-1/sqrt(fan_in), 1/sqrt(fan_in))."""
    kw, kb = jax.random.split(key)
    bound = 1.0 / (fan_in ** 0.5)
    w = jax.random.uniform(kw, (fan_in, fan_out), jnp.float32, -bound, bound)
    b = jax.random.uniform(kb, (1, fan_out), jnp.float32, -bound, bound)
    return w, b


def make_params(key, f_ffnn, f_cnn_flat, h_ffnn, h_cnn, embracement_size,
                post_units, n_classes, p_ffnn):
    ks = jax.random.split(key, 6)
    w_pre_f, b_pre_f = _linear_init(ks[0], f_ffnn, h_ffnn)
    w_pre_c, b_pre_c = _linear_init(ks[1], f_cnn_flat, h_cnn)
    w_d0, b_d0 = _linear_init(ks[2], h_ffnn, embracement_size)
    w_d1, b_d1 = _linear_init(ks[3], h_cnn, embracement_size)
    w_post1, b_post1 = _linear_init(ks[4], embracement_size, post_units)
    w_post2, b_post2 = _linear_init(ks[5], post_units, n_classes)
    return dict(
        w_pre_f=w_pre_f, b_pre_f=b_pre_f,
        w_pre_c=w_pre_c, b_pre_c=b_pre_c,
        w_d0=w_d0, b_d0=b_d0,
        w_d1=w_d1, b_d1=b_d1,
        w_post1=w_post1, b_post1=b_post1,
        w_post2=w_post2, b_post2=b_post2,
        # trial.suggest_float('selection_probabilities_FFNN', 0., 1.) -> 0.6
        selection_probabilities=jnp.array([p_ffnn, 1.0 - p_ffnn], jnp.float32),
    )


if __name__ == "__main__":
    # Hyperparameters a plausible Optuna trial would pick:
    #   EMBRACENET_embracement_size = 512, n_post_layers = 1,
    #   EMBRACENET_n_units_l0 = 128, EMBRACENET_dropout_l0 = 0.0,
    #   selection_probabilities_FFNN = 0.6, n_classes = 2
    B = 8
    F_FFNN = 128            # in_features_FFNN
    C, L = 4, 32            # CNN input NCL -> [B, 4, 32]
    H_FFNN = 128            # FFNN_pre.output_size (stand-in)
    H_CNN = 128             # CNN_pre.output_size (stand-in)
    E = 512                 # embracement_size
    POST_UNITS = 128
    N_CLASSES = 2

    key = jax.random.PRNGKey(0)
    k_xf, k_xc, k_params, k_rng = jax.random.split(key, 4)

    x_ffnn = jax.random.normal(k_xf, (B, F_FFNN), jnp.float32)
    x_cnn = jax.random.normal(k_xc, (B, C, L), jnp.float32)

    params = make_params(k_params, F_FFNN, C * L, H_FFNN, H_CNN, E,
                         POST_UNITS, N_CLASSES, p_ffnn=0.6)

    out = embracenet_multimodal(x_ffnn, x_cnn, params, rng_key=k_rng)
    out = jax.block_until_ready(out)
    assert out.shape == (B, N_CLASSES) and out.dtype == jnp.float32
    assert bool(jnp.all(jnp.isfinite(out)))
    print("KERNEL_OK")
</pallas_src>

<mosaic_0001>
module attributes {stable_mosaic.version = 11 : i64} {
  func.func @embracenet_multimodal_kernel(%arg0: memref<1xf32, #tpu.memory_space<smem>>, %arg1: memref<8x128xf32, #tpu.memory_space<vmem>>, %arg2: memref<8x128xf32, #tpu.memory_space<vmem>>, %arg3: memref<8x512xf32, #tpu.memory_space<vmem>>, %arg4: memref<128x128xbf16, #tpu.memory_space<vmem>>, %arg5: memref<1x128xf32, #tpu.memory_space<vmem>>, %arg6: memref<128x128xbf16, #tpu.memory_space<vmem>>, %arg7: memref<1x128xf32, #tpu.memory_space<vmem>>, %arg8: memref<128x512xbf16, #tpu.memory_space<vmem>>, %arg9: memref<1x512xf32, #tpu.memory_space<vmem>>, %arg10: memref<128x512xbf16, #tpu.memory_space<vmem>>, %arg11: memref<1x512xf32, #tpu.memory_space<vmem>>, %arg12: memref<512x128xbf16, #tpu.memory_space<vmem>>, %arg13: memref<1x128xf32, #tpu.memory_space<vmem>>, %arg14: memref<128x128xbf16, #tpu.memory_space<vmem>>, %arg15: memref<1x128xf32, #tpu.memory_space<vmem>>, %arg16: memref<8x128xf32, #tpu.memory_space<vmem>>) attributes {dimension_semantics = [], scalar_prefetch = 0 : i64, scratch_operands = 0 : i64, tpu.core_type = #tpu.core_type<tc>} {
    %c0 = arith.constant 0 : index
    %c0_0 = arith.constant 0 : index
    %0 = vector.load %arg1[%c0, %c0_0] : memref<8x128xf32, #tpu.memory_space<vmem>>, vector<8x128xf32>
    %1 = arith.truncf %0 : vector<8x128xf32> to vector<8x128xbf16>
    %c0_1 = arith.constant 0 : index
    %c0_2 = arith.constant 0 : index
    %2 = vector.load %arg4[%c0_1, %c0_2] : memref<128x128xbf16, #tpu.memory_space<vmem>>, vector<128x128xbf16>
    %cst = arith.constant dense<0.000000e+00> : vector<8x128xf32>
    %3 = tpu.matmul %1, %2, %cst {dimension_numbers = #tpu.dot_dimension_numbers<[1], [0], [0], [1], [0, 0, 1, 1], [], []>} : vector<8x128xbf16>, vector<128x128xbf16>, vector<8x128xf32> -> vector<8x128xf32>
    %c0_3 = arith.constant 0 : index
    %c0_4 = arith.constant 0 : index
    %4 = vector.load %arg5[%c0_3, %c0_4] : memref<1x128xf32, #tpu.memory_space<vmem>>, vector<1x128xf32>
    %5 = vector.broadcast %4 : vector<1x128xf32> to vector<8x128xf32>
    %6 = arith.addf %3, %5 : vector<8x128xf32>
    %cst_5 = arith.constant 0.000000e+00 : f32
    %7 = vector.broadcast %cst_5 : f32 to vector<8x128xf32>
    %8 = arith.maximumf %6, %7 : vector<8x128xf32>
    %c0_6 = arith.constant 0 : index
    %c0_7 = arith.constant 0 : index
    %9 = vector.load %arg2[%c0_6, %c0_7] : memref<8x128xf32, #tpu.memory_space<vmem>>, vector<8x128xf32>
    %10 = arith.truncf %9 : vector<8x128xf32> to vector<8x128xbf16>
    %c0_8 = arith.constant 0 : index
    %c0_9 = arith.constant 0 : index
    %11 = vector.load %arg6[%c0_8, %c0_9] : memref<128x128xbf16, #tpu.memory_space<vmem>>, vector<128x128xbf16>
    %cst_10 = arith.constant dense<0.000000e+00> : vector<8x128xf32>
    %12 = tpu.matmul %10, %11, %cst_10 {dimension_numbers = #tpu.dot_dimension_numbers<[1], [0], [0], [1], [0, 0, 1, 1], [], []>} : vector<8x128xbf16>, vector<128x128xbf16>, vector<8x128xf32> -> vector<8x128xf32>
    %c0_11 = arith.constant 0 : index
    %c0_12 = arith.constant 0 : index
    %13 = vector.load %arg7[%c0_11, %c0_12] : memref<1x128xf32, #tpu.memory_space<vmem>>, vector<1x128xf32>
    %14 = vector.broadcast %13 : vector<1x128xf32> to vector<8x128xf32>
    %15 = arith.addf %12, %14 : vector<8x128xf32>
    %cst_13 = arith.constant 0.000000e+00 : f32
    %16 = vector.broadcast %cst_13 : f32 to vector<8x128xf32>
    %17 = arith.maximumf %15, %16 : vector<8x128xf32>
    %18 = arith.truncf %8 : vector<8x128xf32> to vector<8x128xbf16>
    %c0_14 = arith.constant 0 : index
    %c0_15 = arith.constant 0 : index
    %19 = vector.load %arg8[%c0_14, %c0_15] : memref<128x512xbf16, #tpu.memory_space<vmem>>, vector<128x512xbf16>
    %cst_16 = arith.constant dense<0.000000e+00> : vector<8x512xf32>
    %20 = tpu.matmul %18, %19, %cst_16 {dimension_numbers = #tpu.dot_dimension_numbers<[1], [0], [0], [1], [0, 0, 1, 1], [], []>} : vector<8x128xbf16>, vector<128x512xbf16>, vector<8x512xf32> -> vector<8x512xf32>
    %c0_17 = arith.constant 0 : index
    %c0_18 = arith.constant 0 : index
    %21 = vector.load %arg9[%c0_17, %c0_18] : memref<1x512xf32, #tpu.memory_space<vmem>>, vector<1x512xf32>
    %22 = vector.broadcast %21 : vector<1x512xf32> to vector<8x512xf32>
    %23 = arith.addf %20, %22 : vector<8x512xf32>
    %cst_19 = arith.constant 0.000000e+00 : f32
    %24 = vector.broadcast %cst_19 : f32 to vector<8x512xf32>
    %25 = arith.maximumf %23, %24 : vector<8x512xf32>
    %26 = arith.truncf %17 : vector<8x128xf32> to vector<8x128xbf16>
    %c0_20 = arith.constant 0 : index
    %c0_21 = arith.constant 0 : index
    %27 = vector.load %arg10[%c0_20, %c0_21] : memref<128x512xbf16, #tpu.memory_space<vmem>>, vector<128x512xbf16>
    %cst_22 = arith.constant dense<0.000000e+00> : vector<8x512xf32>
    %28 = tpu.matmul %26, %27, %cst_22 {dimension_numbers = #tpu.dot_dimension_numbers<[1], [0], [0], [1], [0, 0, 1, 1], [], []>} : vector<8x128xbf16>, vector<128x512xbf16>, vector<8x512xf32> -> vector<8x512xf32>
    %c0_23 = arith.constant 0 : index
    %c0_24 = arith.constant 0 : index
    %29 = vector.load %arg11[%c0_23, %c0_24] : memref<1x512xf32, #tpu.memory_space<vmem>>, vector<1x512xf32>
    %30 = vector.broadcast %29 : vector<1x512xf32> to vector<8x512xf32>
    %31 = arith.addf %28, %30 : vector<8x512xf32>
    %cst_25 = arith.constant 0.000000e+00 : f32
    %32 = vector.broadcast %cst_25 : f32 to vector<8x512xf32>
    %33 = arith.maximumf %31, %32 : vector<8x512xf32>
    %c0_26 = arith.constant 0 : index
    %34 = memref.load %arg0[%c0_26] : memref<1xf32, #tpu.memory_space<smem>>
    %c0_27 = arith.constant 0 : index
    %c0_28 = arith.constant 0 : index
    %35 = vector.load %arg3[%c0_27, %c0_28] : memref<8x512xf32, #tpu.memory_space<vmem>>, vector<8x512xf32>
    %36 = vector.broadcast %34 : f32 to vector<8x512xf32>
    %37 = arith.cmpf olt, %35, %36 : vector<8x512xf32>
    %38 = arith.select %37, %25, %33 : vector<8x512xi1>, vector<8x512xf32>
    %39 = arith.truncf %38 : vector<8x512xf32> to vector<8x512xbf16>
    %c0_29 = arith.constant 0 : index
    %c0_30 = arith.constant 0 : index
    %40 = vector.load %arg12[%c0_29, %c0_30] : memref<512x128xbf16, #tpu.memory_space<vmem>>, vector<512x128xbf16>
    %cst_31 = arith.constant dense<0.000000e+00> : vector<8x128xf32>
    %41 = tpu.matmul %39, %40, %cst_31 {dimension_numbers = #tpu.dot_dimension_numbers<[1], [0], [0], [1], [0, 0, 1, 1], [], []>} : vector<8x512xbf16>, vector<512x128xbf16>, vector<8x128xf32> -> vector<8x128xf32>
    %c0_32 = arith.constant 0 : index
    %c0_33 = arith.constant 0 : index
    %42 = vector.load %arg13[%c0_32, %c0_33] : memref<1x128xf32, #tpu.memory_space<vmem>>, vector<1x128xf32>
    %43 = vector.broadcast %42 : vector<1x128xf32> to vector<8x128xf32>
    %44 = arith.addf %41, %43 : vector<8x128xf32>
    %cst_34 = arith.constant 0.000000e+00 : f32
    %45 = vector.broadcast %cst_34 : f32 to vector<8x128xf32>
    %46 = arith.maximumf %44, %45 : vector<8x128xf32>
    %47 = arith.truncf %46 : vector<8x128xf32> to vector<8x128xbf16>
    %c0_35 = arith.constant 0 : index
    %c0_36 = arith.constant 0 : index
    %48 = vector.load %arg14[%c0_35, %c0_36] : memref<128x128xbf16, #tpu.memory_space<vmem>>, vector<128x128xbf16>
    %cst_37 = arith.constant dense<0.000000e+00> : vector<8x128xf32>
    %49 = tpu.matmul %47, %48, %cst_37 {dimension_numbers = #tpu.dot_dimension_numbers<[1], [0], [0], [1], [0, 0, 1, 1], [], []>} : vector<8x128xbf16>, vector<128x128xbf16>, vector<8x128xf32> -> vector<8x128xf32>
    %c0_38 = arith.constant 0 : index
    %c0_39 = arith.constant 0 : index
    %50 = vector.load %arg15[%c0_38, %c0_39] : memref<1x128xf32, #tpu.memory_space<vmem>>, vector<1x128xf32>
    %51 = vector.broadcast %50 : vector<1x128xf32> to vector<8x128xf32>
    %52 = arith.addf %49, %51 : vector<8x128xf32>
    %c0_40 = arith.constant 0 : index
    %c0_41 = arith.constant 0 : index
    %53 = vector.load %arg16[%c0_40, %c0_41] : memref<8x128xf32, #tpu.memory_space<vmem>>, vector<8x128xf32>
    tpu.vector_store %arg16[%c0_40, %c0_41], %52 {strides = array<i32>} : memref<8x128xf32, #tpu.memory_space<vmem>>, vector<8x128xf32>,
    return
  }
}

</mosaic_0001>

<bundles_post_ra>
// kernel: tpu_custom_call.1
= control target key start
LH: loop header
LB: loop body
LE: loop exit
PB: predicated region body
PF: predicated region fallthrough
CT: control target
= control target key end

     0   :  { %s2452_s0 = inlined_call_operand.<no memory space> [shape: f32[1], index: 0, kind: input, shape index: {}]   ;;  %s2453_s1 = inlined_call_operand.hbm [shape: f32[8,128], index: 1, kind: input, shape index: {}]   ;;  %s2454_s2 = inlined_call_operand.hbm [shape: f32[8,128], index: 2, kind: input, shape index: {}]   ;;  %s2455_s3 = inlined_call_operand.hbm [shape: f32[8,512], index: 3, kind: input, shape index: {}]   ;;  %s2456_s4 = inlined_call_operand.hbm [shape: bf16[128,128], index: 4, kind: input, shape index: {}]   ;;  %s2457_s5 = inlined_call_operand.vmem [shape: f32[1,128], index: 5, kind: input, shape index: {}]   ;;  %s2458_s6 = inlined_call_operand.hbm [shape: bf16[128,128], index: 6, kind: input, shape index: {}]   ;;  %s2459_s7 = inlined_call_operand.vmem [shape: f32[1,128], index: 7, kind: input, shape index: {}]   ;;  %s2460_s8 = inlined_call_operand.hbm [shape: bf16[128,512], index: 8, kind: input, shape index: {}]   ;;  %s2461_s9 = inlined_call_operand.vmem [shape: f32[1,512], index: 9, kind: input, shape index: {}]   ;;  %s2462_s10 = inlined_call_operand.hbm [shape: bf16[128,512], index: 10, kind: input, shape index: {}]   ;;  %s2463_s11 = inlined_call_operand.vmem [shape: f32[1,512], index: 11, kind: input, shape index: {}]   ;;  %s2464_s12 = inlined_call_operand.hbm [shape: bf16[512,128], index: 12, kind: input, shape index: {}]   ;;  %s2465_s13 = inlined_call_operand.vmem [shape: f32[1,128], index: 13, kind: input, shape index: {}]   ;;  %s2466_s14 = inlined_call_operand.hbm [shape: bf16[128,128], index: 14, kind: input, shape index: {}]   ;;  %s2467_s15 = inlined_call_operand.vmem [shape: f32[1,128], index: 15, kind: input, shape index: {}]   ;;  %s2468_s16 = inlined_call_operand.hbm [shape: f32[8,128], index: 16, kind: output, shape index: {}]  }
   0x1   :  { %2471 = sst [smem:[#allocation25_spill]] %s2452_s0 }
   0x2   :  { %22 = vsyncpa [#allocation4], 0 }
   0x3   :  { %23 = vsyncpa [#allocation7], 0 }
   0x4   :  { %24 = vsyncpa [#allocation10], 0 }
   0x5   :  { %25 = vsyncpa [#allocation13], 0 }
   0x6   :  { %26 = vsyncpa [#allocation16], 0 }
   0x7   :  { %27 = vsyncpa [#allocation5], 0  ;;  %s2152_s21 = smov [#allocation6]   ;;  %s2153_s23 = smov [#allocation9]  }
   0x8   :  { %s46_s22 = sshll.u32 %s2152_s21, 4  ;;  %s65_s24 = sshll.u32 %s2153_s23, 4  ;;  %s47_s22 = int_to_ptr.vmem [resolvable:$true] %s46_s22  ;;  %s2254_s24 = int_to_ptr.vmem [resolvable:$true] %s65_s24 }
   0x9   :  { %s1920_s27 = scalar_lea.hbm %s2454_s2, 128 }
   0xa   :  { %p1921_p0 = scmp.ne.s32.totalorder %s2454_s2, %s1920_s27  ;;  %p1924_p1 = scmp.lt.u32.totalorder %s1920_s27, %s2454_s2 }
   0xc   :  { %p1926_p2 = pnand %p1924_p1, %p1921_p0 }
   0xe   :  { %1929 = shalt.err (!%p1926_p2)
}
   0xf   :  { %s1930_s17 = scalar_lea.vmem %s47_s22, 128  ;;  %p1935_p4 = scmp.lt.s32.totalorder %s47_s22, %s47_s22 }
  0x10   :  { %p1931_p3 = scmp.ne.s32.totalorder %s47_s22, %s1930_s17  ;;  %p1936_p5 = scmp.lt.s32.totalorder %s1930_s17, %s1930_s17 }
  0x12   :  { %p1937_p6 = por %p1936_p5, %p1935_p4 }
  0x14   :  { %p1938_p7 = pnand %p1937_p6, %p1931_p3 }
  0x16   :  { %1941 = shalt.err (!%p1938_p7)
}
  0x17   :  { %49 = dma.hbm_to_vmem [thread:$0]  %s2454_s2, 128, %s47_s22, [#allocation7]  }
  0x18   :  { %s1942_s23 = scalar_lea.hbm %s2456_s4, 1024 }
  0x19   :  { %p1943_p8 = scmp.ne.s32.totalorder %s2456_s4, %s1942_s23  ;;  %p1946_p9 = scmp.lt.u32.totalorder %s1942_s23, %s2456_s4 }
  0x1b   :  { %p1948_p10 = pnand %p1946_p9, %p1943_p8 }
  0x1d   :  { %1951 = shalt.err (!%p1948_p10)
}
  0x1e   :  { %s1952_s29 = scalar_lea.vmem %s2254_s24, 1024  ;;  %p1957_p12 = scmp.lt.s32.totalorder %s2254_s24, %s2254_s24 }
  0x1f   :  { %p1953_p11 = scmp.ne.s32.totalorder %s2254_s24, %s1952_s29  ;;  %p1958_p13 = scmp.lt.s32.totalorder %s1952_s29, %s1952_s29 }
  0x21   :  { %p1959_p0 = por %p1958_p13, %p1957_p12 }
  0x23   :  { %p1960_p1 = pnand %p1959_p0, %p1953_p11 }
  0x25   :  { %1963 = shalt.err (!%p1960_p1)
}
  0x26   :  { %s2469_s2 = smov 64   ;;  %s2155_s22 = smov 4  }
  0x27   :  { %71 = dma.hbm_to_vmem [thread:$0]  %s2456_s4, 1024, %s2254_s24, [#allocation10], %s2469_s2, %s2469_s2, %s2155_s22  }
  0x28   :  { %s2156_s17 = smov [#allocation12]   ;;  %s1964_s21 = scalar_lea.hbm %s2460_s8, 4096 }
  0x29   :  { %s93_s18 = sshll.u32 %s2156_s17, 4  ;;  %p1965_p2 = scmp.ne.s32.totalorder %s2460_s8, %s1964_s21  ;;  %s94_s18 = int_to_ptr.vmem [resolvable:$true] %s93_s18 }
  0x2a   :  { %p1968_p3 = scmp.lt.u32.totalorder %s1964_s21, %s2460_s8 }
  0x2c   :  { %p1970_p4 = pnand %p1968_p3, %p1965_p2 }
  0x2e   :  { %1973 = shalt.err (!%p1970_p4)
}
  0x2f   :  { %s1974_s28 = scalar_lea.vmem %s94_s18, 4096  ;;  %p1979_p6 = scmp.lt.s32.totalorder %s94_s18, %s94_s18 }
  0x30   :  { %p1975_p5 = scmp.ne.s32.totalorder %s94_s18, %s1974_s28  ;;  %p1980_p7 = scmp.lt.s32.totalorder %s1974_s28, %s1974_s28 }
  0x32   :  { %p1981_p8 = por %p1980_p7, %p1979_p6 }
  0x34   :  { %p1982_p9 = pnand %p1981_p8, %p1975_p5 }
  0x36   :  { %1985 = shalt.err (!%p1982_p9)
}
  0x37   :  { %s2157_s4 = smov 256   ;;  %s2158_s24 = smov 16  }
  0x38   :  { %99 = dma.hbm_to_vmem [thread:$0]  %s2460_s8, 4096, %s94_s18, [#allocation13], %s2157_s4, %s2157_s4, %s2158_s24  }
  0x39   :  { %s2159_s0 = smov [#allocation15]   ;;  %s2160_s19 = smov [#allocation3]  }
  0x3a   :  { %s121_s17 = sshll.u32 %s2159_s0, 4  ;;  %s36_s20 = sshll.u32 %s2160_s19, 4  ;;  %s122_s17 = int_to_ptr.vmem [resolvable:$true] %s121_s17  ;;  %s37_s20 = int_to_ptr.vmem [resolvable:$true] %s36_s20 }
  0x3b   :  { %s1986_s25 = scalar_lea.hbm %s2464_s12, 4096 }
  0x3c   :  { %p1987_p10 = scmp.ne.s32.totalorder %s2464_s12, %s1986_s25  ;;  %p1990_p11 = scmp.lt.u32.totalorder %s1986_s25, %s2464_s12 }
  0x3e   :  { %p1992_p12 = pnand %p1990_p11, %p1987_p10 }
  0x40   :  { %1995 = shalt.err (!%p1992_p12)
}
  0x41   :  { %s1996_s8 = scalar_lea.vmem %s122_s17, 4096  ;;  %p2001_p0 = scmp.lt.s32.totalorder %s122_s17, %s122_s17 }
  0x42   :  { %p1997_p13 = scmp.ne.s32.totalorder %s122_s17, %s1996_s8  ;;  %p2002_p1 = scmp.lt.s32.totalorder %s1996_s8, %s1996_s8 }
  0x44   :  { %p2003_p2 = por %p2002_p1, %p2001_p0 }
  0x46   :  { %p2004_p3 = pnand %p2003_p2, %p1997_p13 }
  0x48   :  { %2007 = shalt.err (!%p2004_p3)
}
  0x49   :  { %s2472_s18 = smov 64   ;;  %s2008_s19 = scalar_lea.hbm %s2453_s1, 128 }
  0x4a   :  { %127 = dma.hbm_to_vmem [thread:$0]  %s2464_s12, 4096, %s122_s17, [#allocation16], %s2472_s18, %s2472_s18, %s2155_s22  }
  0x4b   :  { %p2009_p4 = scmp.ne.s32.totalorder %s2453_s1, %s2008_s19  ;;  %p2012_p5 = scmp.lt.u32.totalorder %s2008_s19, %s2453_s1 }
  0x4d   :  { %p2014_p6 = pnand %p2012_p5, %p2009_p4 }
  0x4f   :  { %2017 = shalt.err (!%p2014_p6)
}
  0x50   :  { %s2018_s27 = scalar_lea.vmem %s37_s20, 128  ;;  %p2023_p8 = scmp.lt.s32.totalorder %s37_s20, %s37_s20 }
  0x51   :  { %p2019_p7 = scmp.ne.s32.totalorder %s37_s20, %s2018_s27  ;;  %p2024_p9 = scmp.lt.s32.totalorder %s2018_s27, %s2018_s27 }
  0x53   :  { %p2025_p10 = por %p2024_p9, %p2023_p8 }
  0x55   :  { %p2026_p11 = pnand %p2025_p10, %p2019_p7 }
  0x57   :  { %2029 = shalt.err (!%p2026_p11)
}
  0x58   :  { %39 = dma.hbm_to_vmem [thread:$0]  %s2453_s1, 128, %s37_s20, [#allocation4]  }
  0x59   :  { %s2161_s28 = smov [#allocation8]   ;;  %s2162_s29 = smov [#allocation11]  }
  0x5a   :  { %s56_s8 = sshll.u32 %s2161_s28, 4  ;;  %s79_s30 = sshll.u32 %s2162_s29, 4  ;;  %s57_s8 = int_to_ptr.vmem [resolvable:$true] %s56_s8  ;;  %s80_s30 = int_to_ptr.vmem [resolvable:$true] %s79_s30 }
  0x5b   :  { %s2030_s19 = scalar_lea.hbm %s2455_s3, 512 }
  0x5c   :  { %p2031_p12 = scmp.ne.s32.totalorder %s2455_s3, %s2030_s19  ;;  %p2034_p13 = scmp.lt.u32.totalorder %s2030_s19, %s2455_s3 }
  0x5e   :  { %p2036_p0 = pnand %p2034_p13, %p2031_p12 }
  0x60   :  { %2039 = shalt.err (!%p2036_p0)
}
  0x61   :  { %s2040_s1 = scalar_lea.vmem %s57_s8, 512  ;;  %p2045_p2 = scmp.lt.s32.totalorder %s57_s8, %s57_s8 }
  0x62   :  { %p2041_p1 = scmp.ne.s32.totalorder %s57_s8, %s2040_s1  ;;  %p2046_p3 = scmp.lt.s32.totalorder %s2040_s1, %s2040_s1 }
  0x64   :  { %p2047_p4 = por %p2046_p3, %p2045_p2 }
  0x66   :  { %p2048_p5 = pnand %p2047_p4, %p2041_p1 }
  0x68   :  { %2051 = shalt.err (!%p2048_p5)
}
  0x69   :  { %59 = dma.hbm_to_vmem [thread:$0]  %s2455_s3, 512, %s57_s8, [#allocation7]  }
  0x6a   :  { %s2052_s28 = scalar_lea.hbm %s2458_s6, 1024 }
  0x6b   :  { %p2053_p6 = scmp.ne.s32.totalorder %s2458_s6, %s2052_s28  ;;  %p2056_p7 = scmp.lt.u32.totalorder %s2052_s28, %s2458_s6 }
  0x6d   :  { %p2058_p8 = pnand %p2056_p7, %p2053_p6 }
  0x6f   :  { %2061 = shalt.err (!%p2058_p8)
}
  0x70   :  { %s2062_s21 = scalar_lea.vmem %s80_s30, 1024  ;;  %p2067_p10 = scmp.lt.s32.totalorder %s80_s30, %s80_s30 }
  0x71   :  { %p2063_p9 = scmp.ne.s32.totalorder %s80_s30, %s2062_s21  ;;  %p2068_p11 = scmp.lt.s32.totalorder %s2062_s21, %s2062_s21 }
  0x73   :  { %p2069_p12 = por %p2068_p11, %p2067_p10 }
  0x75   :  { %p2070_p13 = pnand %p2069_p12, %p2063_p9 }
  0x77   :  { %2073 = shalt.err (!%p2070_p13)
}
  0x78   :  { %85 = dma.hbm_to_vmem [thread:$0]  %s2458_s6, 1024, %s80_s30, [#allocation10], %s2472_s18, %s2472_s18, %s2155_s22  }
  0x79   :  { %s2163_s23 = smov [#allocation14]   ;;  %s2164_s26 = smov [#allocation17]  }
  0x7a   :  { %s107_s25 = sshll.u32 %s2163_s23, 4  ;;  %s135_s1 = sshll.u32 %s2164_s26, 4  ;;  %s108_s25 = int_to_ptr.vmem [resolvable:$true] %s107_s25  ;;  %s136_s1 = int_to_ptr.vmem [resolvable:$true] %s135_s1 }
  0x7b   :  { %s2074_s12 = scalar_lea.hbm %s2462_s10, 4096 }
  0x7c   :  { %p2075_p0 = scmp.ne.s32.totalorder %s2462_s10, %s2074_s12  ;;  %p2078_p1 = scmp.lt.u32.totalorder %s2074_s12, %s2462_s10 }
  0x7e   :  { %p2080_p2 = pnand %p2078_p1, %p2075_p0 }
  0x80   :  { %2083 = shalt.err (!%p2080_p2)
}
  0x81   :  { %s2084_s6 = scalar_lea.vmem %s108_s25, 4096  ;;  %p2089_p4 = scmp.lt.s32.totalorder %s108_s25, %s108_s25 }
  0x82   :  { %p2085_p3 = scmp.ne.s32.totalorder %s108_s25, %s2084_s6  ;;  %p2090_p5 = scmp.lt.s32.totalorder %s2084_s6, %s2084_s6 }
  0x84   :  { %p2091_p6 = por %p2090_p5, %p2089_p4 }
  0x86   :  { %p2092_p7 = pnand %p2091_p6, %p2085_p3 }
  0x88   :  { %2095 = shalt.err (!%p2092_p7)
}
  0x89   :  { %113 = dma.hbm_to_vmem [thread:$0]  %s2462_s10, 4096, %s108_s25, [#allocation13], %s2157_s4, %s2157_s4, %s2158_s24  }
  0x8a   :  { %s2096_s3 = scalar_lea.hbm %s2466_s14, 1024 }
  0x8b   :  { %p2097_p8 = scmp.ne.s32.totalorder %s2466_s14, %s2096_s3  ;;  %p2100_p9 = scmp.lt.u32.totalorder %s2096_s3, %s2466_s14 }
  0x8d   :  { %p2102_p10 = pnand %p2100_p9, %p2097_p8 }
  0x8f   :  { %2105 = shalt.err (!%p2102_p10)
}
  0x90   :  { %s2106_s27 = scalar_lea.vmem %s136_s1, 1024  ;;  %p2111_p12 = scmp.lt.s32.totalorder %s136_s1, %s136_s1 }
  0x91   :  { %p2107_p11 = scmp.ne.s32.totalorder %s136_s1, %s2106_s27  ;;  %p2112_p13 = scmp.lt.s32.totalorder %s2106_s27, %s2106_s27 }
  0x93   :  { %p2113_p0 = por %p2112_p13, %p2111_p12 }
  0x95   :  { %p2114_p1 = pnand %p2113_p0, %p2107_p11 }
  0x97   :  { %2117 = shalt.err (!%p2114_p1)
}
  0x98   :  { %141 = dma.hbm_to_vmem [thread:$0]  %s2466_s14, 1024, %s136_s1, [#allocation16], %s2472_s18, %s2472_s18, %s2155_s22  }
  0x99   :  { %2140 = dma.done.wait [#allocation4], 128  }
  0x9a   :  { %2141 = vsyncadd [#allocation4], 4294967168 }
  0x9b   :  { %2142 = dma.done.wait [#allocation7], 640  }
  0x9c   :  { %2143 = vsyncadd [#allocation7], 4294966656 }
  0x9d   :  { %2144 = dma.done.wait [#allocation10], 2048  }
  0x9e   :  { %2145 = vsyncadd [#allocation10], 4294965248 }
  0x9f   :  { %2146 = dma.done.wait [#allocation13], 8192  }
  0xa0   :  { %2147 = vsyncadd [#allocation13], 4294959104 }
  0xa1   :  { %2148 = dma.done.wait [#allocation16], 5120  }
  0xa2   :  { %2149 = vsyncadd [#allocation16], 4294962176  ;;  %v2165_v0 = vmov 0.0   ;;  %vm2166_vm0 = vmmov 0   ;;  %v1768_v1 = vld [vmem:[#allocation9] sm:$0xff]   ;;  %v1769_v2 = vld [vmem:[#allocation9 + $0x8] sm:$0xff]  }
  0xa3   :  { %1691 = vmatprep.subr.bf16.mxu0 %v2165_v0  ;;  %1711 = vmatprep.subr.bf16.mxu1 %v2165_v0  ;;  %v1770_v3 = vld [vmem:[#allocation9 + $0x10] sm:$0xff]   ;;  %v1776_v4 = vld [vmem:[#allocation11] sm:$0xff]   ;;  %v1771_v5 = vld [vmem:[#allocation9 + $0x18] sm:$0xff]   ;;  %v2167_v55 = vmov 0   ;;  %s2473_s28 = sld [smem:[#allocation25_spill]]  ;;  %s2168_s6 = smov [#allocation18]  }
  0xa4   :  { %1707 = vmatprep.mubr.msk.bf16.mxu0 %vm2166_vm0, %v2165_v0  ;;  %1727 = vmatprep.mubr.msk.bf16.mxu1 %vm2166_vm0, %v2165_v0  ;;  %v1777_v6 = vld [vmem:[#allocation11 + $0x8] sm:$0xff]   ;;  %v1772_v7 = vld [vmem:[#allocation9 + $0x20] sm:$0xff]   ;;  %v1778_v8 = vld [vmem:[#allocation11 + $0x10] sm:$0xff]   ;;  %s1483_s30 = sshll.u32 %s2168_s6, 4  ;;  %s1484_s30 = int_to_ptr.vmem [resolvable:$true] %s1483_s30 }
  0xa5   :  { %1692 = vmatpush3.bf16.msra.mxu0 %v1768_v1  ;;  %1712 = vmatpush3.bf16.msra.mxu1 %v1776_v4  ;;  %v1773_v9 = vld [vmem:[#allocation9 + $0x28] sm:$0xff]   ;;  %v1779_v10 = vld [vmem:[#allocation11 + $0x18] sm:$0xff]   ;;  %v1774_v11 = vld [vmem:[#allocation9 + $0x30] sm:$0xff]   ;;  %p2123_p3 = scmp.lt.s32.totalorder %s1484_s30, %s1484_s30 }
  0xa6   :  { %1693 = vmatprep.subr.bf16.mxu0 %v2165_v0  ;;  %1713 = vmatprep.subr.bf16.mxu1 %v2165_v0  ;;  %v1780_v12 = vld [vmem:[#allocation11 + $0x20] sm:$0xff]   ;;  %v1775_v13 = vld [vmem:[#allocation9 + $0x38] sm:$0xff]   ;;  %v172_v14 = vld [vmem:[#allocation3] sm:$0xff] }
  0xa7   :  { %v1781_v15 = vld [vmem:[#allocation11 + $0x28] sm:$0xff]   ;;  %v1786_v16 = vld [vmem:[#allocation12 + $0x4] ss:$16 sps:$4 sm:$0xff]   ;;  %v173_v17 = vpack.c.bf16 %v172_v14, %v172_v14  ;;  %v1784_v19 = vld [vmem:[#allocation12] ss:$16 sps:$4 sm:$0xff]  }
  0xa8   :  { %v1782_v18 = vld [vmem:[#allocation11 + $0x30] sm:$0xff]   ;;  %v1783_v21 = vld [vmem:[#allocation11 + $0x38] sm:$0xff]  }
  0xa9   :  { %1694 = vmatpush3.bf16.msra.mxu0 %v1769_v2  ;;  %1714 = vmatpush3.bf16.msra.mxu1 %v1777_v6  ;;  %v1792_v20 = vld [vmem:[#allocation12 + $0x24] ss:$16 sps:$4 sm:$0xff]   ;;  %v286_v22 = vld [vmem:[#allocation6] sm:$0xff]  ;;  %v1790_v23 = vld [vmem:[#allocation12 + $0x20] ss:$16 sps:$4 sm:$0xff]  }
  0xaa   :  { %1695 = vmatprep.subr.bf16.mxu0 %v2165_v0  ;;  %1715 = vmatprep.subr.bf16.mxu1 %v2165_v0  ;;  %v1789_v24 = vld [vmem:[#allocation12 + $0xc] ss:$16 sps:$4 sm:$0xff]   ;;  %v1798_v25 = vld [vmem:[#allocation12 + $0x44] ss:$16 sps:$4 sm:$0xff]   ;;  %v1787_v26 = vld [vmem:[#allocation12 + $0x8] ss:$16 sps:$4 sm:$0xff]   ;;  %v287_v28 = vpack.c.bf16 %v286_v22, %v286_v22 }
  0xab   :  { %v1796_v27 = vld [vmem:[#allocation12 + $0x40] ss:$16 sps:$4 sm:$0xff]   ;;  %v1795_v29 = vld [vmem:[#allocation12 + $0x2c] ss:$16 sps:$4 sm:$0xff]   ;;  %v1804_v30 = vld [vmem:[#allocation12 + $0x64] ss:$16 sps:$4 sm:$0xff]  }
  0xac   :  { %v1793_v31 = vld [vmem:[#allocation12 + $0x28] ss:$16 sps:$4 sm:$0xff]   ;;  %v1802_v32 = vld [vmem:[#allocation12 + $0x60] ss:$16 sps:$4 sm:$0xff]   ;;  %v1801_v33 = vld [vmem:[#allocation12 + $0x4c] ss:$16 sps:$4 sm:$0xff]  }
  0xad   :  { %1696 = vmatpush3.bf16.msra.mxu0 %v1770_v3  ;;  %1716 = vmatpush3.bf16.msra.mxu1 %v1778_v8  ;;  %v1810_v34 = vld [vmem:[#allocation12 + $0x84] ss:$16 sps:$4 sm:$0xff]   ;;  %v1799_v35 = vld [vmem:[#allocation12 + $0x48] ss:$16 sps:$4 sm:$0xff]   ;;  %v1808_v36 = vld [vmem:[#allocation12 + $0x80] ss:$16 sps:$4 sm:$0xff]  }
  0xae   :  { %1697 = vmatprep.subr.bf16.mxu0 %v2165_v0  ;;  %1717 = vmatprep.subr.bf16.mxu1 %v2165_v0  ;;  %v1807_v37 = vld [vmem:[#allocation12 + $0x6c] ss:$16 sps:$4 sm:$0xff]   ;;  %v1816_v38 = vld [vmem:[#allocation12 + $0xa4] ss:$16 sps:$4 sm:$0xff]   ;;  %v1805_v39 = vld [vmem:[#allocation12 + $0x68] ss:$16 sps:$4 sm:$0xff]  }
  0xaf   :  { %v1814_v40 = vld [vmem:[#allocation12 + $0xa0] ss:$16 sps:$4 sm:$0xff]   ;;  %v1813_v41 = vld [vmem:[#allocation12 + $0x8c] ss:$16 sps:$4 sm:$0xff]   ;;  %v1822_v42 = vld [vmem:[#allocation12 + $0xc4] ss:$16 sps:$4 sm:$0xff]  }
  0xb0   :  { %v1811_v43 = vld [vmem:[#allocation12 + $0x88] ss:$16 sps:$4 sm:$0xff]   ;;  %v1820_v44 = vld [vmem:[#allocation12 + $0xc0] ss:$16 sps:$4 sm:$0xff]   ;;  %v1819_v45 = vld [vmem:[#allocation12 + $0xac] ss:$16 sps:$4 sm:$0xff]  }
  0xb1   :  { %1698 = vmatpush3.bf16.msra.mxu0 %v1771_v5  ;;  %1718 = vmatpush3.bf16.msra.mxu1 %v1779_v10  ;;  %v1817_v46 = vld [vmem:[#allocation12 + $0xa8] ss:$16 sps:$4 sm:$0xff]   ;;  %v1825_v47 = vld [vmem:[#allocation12 + $0xcc] ss:$16 sps:$4 sm:$0xff]   ;;  %v1828_v49 = vld [vmem:[#allocation12 + $0xe4] ss:$16 sps:$4 sm:$0xff]  }
  0xb2   :  { %1699 = vmatprep.subr.bf16.mxu0 %v2165_v0  ;;  %1719 = vmatprep.subr.bf16.mxu1 %v2165_v0  ;;  %v1823_v48 = vld [vmem:[#allocation12 + $0xc8] ss:$16 sps:$4 sm:$0xff]   ;;  %v1831_v50 = vld [vmem:[#allocation12 + $0xec] ss:$16 sps:$4 sm:$0xff]   ;;  %v1826_v51 = vld [vmem:[#allocation12 + $0xe0] ss:$16 sps:$4 sm:$0xff]  }
  0xb3   :  { %v1829_v52 = vld [vmem:[#allocation12 + $0xe8] ss:$16 sps:$4 sm:$0xff]   ;;  %v1834_v53 = vld [vmem:[#allocation14 + $0x4] ss:$16 sps:$4 sm:$0xff]   ;;  %v1837_v54 = vld [vmem:[#allocation14 + $0xc] ss:$16 sps:$4 sm:$0xff]  }
  0xb4   :  { %v1496_v56 = vld [vmem:[%s2457_s5] ss:$0 sm:$0xff]  ;;  %v1835_v1 = vld [vmem:[#allocation14 + $0x8] ss:$16 sps:$4 sm:$0xff]   ;;  %v1840_v3 = vld [vmem:[#allocation14 + $0x24] ss:$16 sps:$4 sm:$0xff]  }
  0xb5   :  { %1700 = vmatpush3.bf16.msra.mxu0 %v1772_v7  ;;  %1720 = vmatpush3.bf16.msra.mxu1 %v1780_v12  ;;  %v1832_v63 = vld [vmem:[#allocation14] ss:$16 sps:$4 sm:$0xff]   ;;  %v1843_v4 = vld [vmem:[#allocation14 + $0x2c] ss:$16 sps:$4 sm:$0xff]   ;;  %v1841_v6 = vld [vmem:[#allocation14 + $0x28] ss:$16 sps:$4 sm:$0xff]  }
  0xb6   :  { %1701 = vmatprep.subr.bf16.mxu0 %v2165_v0  ;;  %1721 = vmatprep.subr.bf16.mxu1 %v2165_v0  ;;  %v1838_v5 = vld [vmem:[#allocation14 + $0x20] ss:$16 sps:$4 sm:$0xff]   ;;  %v1846_v8 = vld [vmem:[#allocation14 + $0x44] ss:$16 sps:$4 sm:$0xff]   ;;  %v1847_v14 = vld [vmem:[#allocation14 + $0x48] ss:$16 sps:$4 sm:$0xff]  }
  0xb7   :  { %v1859_v22 = vld [vmem:[#allocation14 + $0x88] ss:$16 sps:$4 sm:$0xff]  }
  0xb9   :  { %1702 = vmatpush3.bf16.msra.mxu0 %v1773_v9  ;;  %1722 = vmatpush3.bf16.msra.mxu1 %v1781_v15  ;;  %v1849_v9 = vld [vmem:[#allocation14 + $0x4c] ss:$16 sps:$4 sm:$0xff]   ;;  %v1852_v15 = vld [vmem:[#allocation14 + $0x64] ss:$16 sps:$4 sm:$0xff]  }
  0xba   :  { %1703 = vmatprep.subr.bf16.mxu0 %v2165_v0  ;;  %1723 = vmatprep.subr.bf16.mxu1 %v2165_v0 }
  0xbd   :  { %1704 = vmatpush3.bf16.msra.mxu0 %v1774_v11  ;;  %1724 = vmatpush3.bf16.msra.mxu1 %v1782_v18  ;;  %v1853_v18 = vld [vmem:[#allocation14 + $0x68] ss:$16 sps:$4 sm:$0xff]  }
  0xbe   :  { %1705 = vmatprep.subr.bf16.mxu0 %v2165_v0  ;;  %1725 = vmatprep.subr.bf16.mxu1 %v2165_v0 }
  0xc1   :  { %1706 = vmatpush3.bf16.msra.mxu0 %v1775_v13  ;;  %1726 = vmatpush3.bf16.msra.mxu1 %v1783_v21  ;;  %v1844_v13 = vld [vmem:[#allocation14 + $0x40] ss:$16 sps:$4 sm:$0xff]  }
  0xc2   :  { %615 = vmatprep.subr.bf16.mxu0 %v1786_v16  ;;  %656 = vmatprep.subr.bf16.mxu1 %v1789_v24  ;;  %v1855_v16 = vld [vmem:[#allocation14 + $0x6c] ss:$16 sps:$4 sm:$0xff]   ;;  %v1856_v21 = vld [vmem:[#allocation14 + $0x80] ss:$16 sps:$4 sm:$0xff]  }
  0xc3   :  { %v1867_v24 = vld [vmem:[#allocation14 + $0xac] ss:$16 sps:$4 sm:$0xff]  }
  0xc4   :  { %1708 = vmatmul.mubr.bf16.vlgmr.msra.gmra.mrb[0].mxu0 %v173_v17  ;;  %1728 = vmatmul.mubr.bf16.vlgmr.msra.gmra.mrb[0].mxu1 %v287_v28  ;;  %v1850_v17 = vld [vmem:[#allocation14 + $0x60] ss:$16 sps:$4 sm:$0xff]   ;;  %v1870_v28 = vld [vmem:[#allocation14 + $0xc4] ss:$16 sps:$4 sm:$0xff]  }
  0xc5   :  { %616 = vmatpush1.bf16.msra.mxu0 %v1784_v19  ;;  %657 = vmatpush1.bf16.msra.mxu1 %v1787_v26  ;;  %v1858_v19 = vld [vmem:[#allocation14 + $0x84] ss:$16 sps:$4 sm:$0xff]   ;;  %v1865_v26 = vld [vmem:[#allocation14 + $0xa8] ss:$16 sps:$4 sm:$0xff]  }
  0xc6   :  { %617 = vmatprep.subr.bf16.mxu0 %v1792_v20  ;;  %658 = vmatprep.subr.bf16.mxu1 %v1795_v29  ;;  %v1861_v20 = vld [vmem:[#allocation14 + $0x8c] ss:$16 sps:$4 sm:$0xff]  }
  0xc7   :  { %647 = vmatprep.mubr.bf16.mxu0 %v2167_v55  ;;  %688 = vmatprep.mubr.bf16.mxu1 %v2167_v55  ;;  %v1873_v29 = vld [vmem:[#allocation14 + $0xcc] ss:$16 sps:$4 sm:$0xff]  }
  0xc9   :  { %618 = vmatpush1.bf16.msra.mxu0 %v1790_v23  ;;  %659 = vmatpush1.bf16.msra.mxu1 %v1793_v31  ;;  %v1864_v23 = vld [vmem:[#allocation14 + $0xa4] ss:$16 sps:$4 sm:$0xff]   ;;  %v1868_v31 = vld [vmem:[#allocation14 + $0xc0] ss:$16 sps:$4 sm:$0xff]  }
  0xca   :  { %619 = vmatprep.subr.bf16.mxu0 %v1798_v25  ;;  %660 = vmatprep.subr.bf16.mxu1 %v1801_v33  ;;  %v1862_v25 = vld [vmem:[#allocation14 + $0xa0] ss:$16 sps:$4 sm:$0xff]   ;;  %v1876_v33 = vld [vmem:[#allocation14 + $0xe4] ss:$16 sps:$4 sm:$0xff]  }
  0xcd   :  { %620 = vmatpush1.bf16.msra.mxu0 %v1796_v27  ;;  %661 = vmatpush1.bf16.msra.mxu1 %v1799_v35  ;;  %v1505_v27 = vld [vmem:[%s2459_s7] ss:$0 sm:$0xff] }
  0xce   :  { %621 = vmatprep.subr.bf16.mxu0 %v1804_v30  ;;  %662 = vmatprep.subr.bf16.mxu1 %v1807_v37  ;;  %v1877_v37 = vld [vmem:[#allocation14 + $0xe8] ss:$16 sps:$4 sm:$0xff]  }
  0xd1   :  { %622 = vmatpush1.bf16.msra.mxu0 %v1802_v32  ;;  %663 = vmatpush1.bf16.msra.mxu1 %v1805_v39  ;;  %v1871_v32 = vld [vmem:[#allocation14 + $0xc8] ss:$16 sps:$4 sm:$0xff]   ;;  %v1880_v39 = vld [vmem:[#allocation15 + $0x40] sm:$0xff]  }
  0xd2   :  { %623 = vmatprep.subr.bf16.mxu0 %v1810_v34  ;;  %664 = vmatprep.subr.bf16.mxu1 %v1813_v41  ;;  %v1879_v34 = vld [vmem:[#allocation14 + $0xec] ss:$16 sps:$4 sm:$0xff]   ;;  %v1882_v41 = vld [vmem:[#allocation15] sm:$0xff]  }
  0xd5   :  { %624 = vmatpush1.bf16.msra.mxu0 %v1808_v36  ;;  %665 = vmatpush1.bf16.msra.mxu1 %v1811_v43  ;;  %v1874_v36 = vld [vmem:[#allocation14 + $0xe0] ss:$16 sps:$4 sm:$0xff]   ;;  %v1884_v43 = vld [vmem:[#allocation15 + $0x48] sm:$0xff]  }
  0xd6   :  { %625 = vmatprep.subr.bf16.mxu0 %v1816_v38  ;;  %666 = vmatprep.subr.bf16.mxu1 %v1819_v45  ;;  %v1886_v45 = vld [vmem:[#allocation15 + $0x8] sm:$0xff]  }
  0xd9   :  { %626 = vmatpush1.bf16.msra.mxu0 %v1814_v40  ;;  %667 = vmatpush1.bf16.msra.mxu1 %v1817_v46  ;;  %v1881_v40 = vld [vmem:[#allocation15 + $0xc0] sm:$0xff]   ;;  %v1887_v46 = vld [vmem:[#allocation15 + $0x88] sm:$0xff]  }
  0xda   :  { %627 = vmatprep.subr.bf16.mxu0 %v1822_v42  ;;  %668 = vmatprep.subr.bf16.mxu1 %v1825_v47  ;;  %v1883_v42 = vld [vmem:[#allocation15 + $0x80] sm:$0xff]   ;;  %v1888_v47 = vld [vmem:[#allocation15 + $0x50] sm:$0xff]  }
  0xdd   :  { %628 = vmatpush1.bf16.msra.mxu0 %v1820_v44  ;;  %669 = vmatpush1.bf16.msra.mxu1 %v1823_v48  ;;  %v1885_v44 = vld [vmem:[#allocation15 + $0xc8] sm:$0xff]   ;;  %v1889_v48 = vld [vmem:[#allocation15 + $0xd0] sm:$0xff]  }
  0xde   :  { %629 = vmatprep.subr.bf16.mxu0 %v1828_v49  ;;  %670 = vmatprep.subr.bf16.mxu1 %v1831_v50  ;;  %v1890_v49 = vld [vmem:[#allocation15 + $0x10] sm:$0xff]  }
  0xdf   :  { %v1891_v50 = vld [vmem:[#allocation15 + $0x90] sm:$0xff]  }
  0xe1   :  { %630 = vmatpush1.bf16.msra.mxu0 %v1826_v51  ;;  %671 = vmatpush1.bf16.msra.mxu1 %v1829_v52  ;;  %v1892_v51 = vld [vmem:[#allocation15 + $0x58] sm:$0xff]  }
  0xe2   :  { %916 = vmatprep.subr.bf16.mxu0 %v1834_v53  ;;  %957 = vmatprep.subr.bf16.mxu1 %v1837_v54  ;;  %v1893_v52 = vld [vmem:[#allocation15 + $0xd8] sm:$0xff]  }
  0xe3   :  { %v1894_v53 = vld [vmem:[#allocation15 + $0x18] sm:$0xff]  }
  0xe4   :  { %v1895_v54 = vld [vmem:[#allocation15 + $0x98] sm:$0xff]  }
 0x197   :  { %v279_v57 = vpop.f32.mrb[0].mxu0  ;;  %v393_v7 = vpop.f32.mrb[0].mxu1 }
 0x198   :  { %v280_v58 = vadd.f32 %v1496_v56, %v279_v57  ;;  %v1709_v59 = vpop.f32.mrb[1].mxu0  ;;  %v1729_v10 = vpop.f32.mrb[1].mxu1  ;;  %v394_v30 = vadd.f32 %v1505_v27, %v393_v7  ;;  %v1897_v56 = vld [vmem:[#allocation15 + $0xe0] sm:$0xff]   ;;  %v1911_v7 = vld [vmem:[#allocation15 + $0xb8] sm:$0xff]  }
 0x199   :  { %v282_v60 = vpop.f32.mrb[2].mxu0  ;;  %v396_v11 = vpop.f32.mrb[2].mxu1  ;;  %v1898_v57 = vld [vmem:[#allocation15 + $0x20] sm:$0xff]   ;;  %v1900_v59 = vld [vmem:[#allocation15 + $0x68] sm:$0xff]  }
 0x19a   :  { %v285_v61 = vmax.f32 %v280_v58, 0.0  ;;  %v1710_v62 = vpop.f32.mrb[3].mxu0  ;;  %v1730_v12 = vpop.f32.mrb[3].mxu1  ;;  %v399_v35 = vmax.f32 %v394_v30, 0.0  ;;  %v1899_v58 = vld [vmem:[#allocation15 + $0xa0] sm:$0xff]   ;;  %v1901_v60 = vld [vmem:[#allocation15 + $0xe8] sm:$0xff]  }
 0x19b   :  { %v1903_v62 = vld [vmem:[#allocation15 + $0xa8] sm:$0xff]   ;;  %v1003_v30 = vld [vmem:[#allocation8] sm:$0xff] }
 0x19c   :  { %v400_v2 = vpack.c.bf16 %v285_v61, %v285_v61  ;;  %v701_v38 = vpack.c.bf16 %v399_v35, %v399_v35  ;;  %v1902_v61 = vld [vmem:[#allocation15 + $0x28] sm:$0xff]  }
 0x19e   :  { %648 = vmatmul.mubr.bf16.vlgmr.msra.gmra.mrb[4].mxu0 %v400_v2  ;;  %689 = vmatmul.mubr.bf16.vlgmr.msra.gmra.mrb[4].mxu1 %v400_v2  ;;  %v1906_v2 = vld [vmem:[#allocation15 + $0x30] sm:$0xff]  }
 0x19f   :  { %917 = vmatpush1.bf16.msra.mxu0 %v1832_v63  ;;  %958 = vmatpush1.bf16.msra.mxu1 %v1835_v1  ;;  %v1904_v63 = vld [vmem:[#allocation15 + $0x70] sm:$0xff]  }
 0x1a0   :  { %918 = vmatprep.subr.bf16.mxu0 %v1840_v3  ;;  %959 = vmatprep.subr.bf16.mxu1 %v1843_v4  ;;  %v1905_v1 = vld [vmem:[#allocation15 + $0xf0] sm:$0xff]   ;;  %v1908_v4 = vld [vmem:[#allocation15 + $0x78] sm:$0xff]  }
 0x1a1   :  { %948 = vmatprep.mubr.bf16.mxu0 %v2167_v55  ;;  %989 = vmatprep.mubr.bf16.mxu1 %v2167_v55  ;;  %v1896_v55 = vld [vmem:[#allocation15 + $0x60] sm:$0xff]   ;;  %v1907_v3 = vld [vmem:[#allocation15 + $0xb0] sm:$0xff]  }
 0x1a3   :  { %919 = vmatpush1.bf16.msra.mxu0 %v1838_v5  ;;  %960 = vmatpush1.bf16.msra.mxu1 %v1841_v6  ;;  %v1909_v5 = vld [vmem:[#allocation15 + $0xf8] sm:$0xff]  }
 0x1a4   :  { %920 = vmatprep.subr.bf16.mxu0 %v1846_v8  ;;  %961 = vmatprep.subr.bf16.mxu1 %v1849_v9  ;;  %v1910_v6 = vld [vmem:[#allocation15 + $0x38] sm:$0xff]  }
 0x1a7   :  { %921 = vmatpush1.bf16.msra.mxu0 %v1844_v13  ;;  %962 = vmatpush1.bf16.msra.mxu1 %v1847_v14 }
 0x1a8   :  { %922 = vmatprep.subr.bf16.mxu0 %v1852_v15  ;;  %963 = vmatprep.subr.bf16.mxu1 %v1855_v16  ;;  %v435_v16 = vlaneseq }
 0x1ab   :  { %923 = vmatpush1.bf16.msra.mxu0 %v1850_v17  ;;  %964 = vmatpush1.bf16.msra.mxu1 %v1853_v18  ;;  %v436_v17 = vshrl.u32 %v435_v16, 7  ;;  %v1578_v16 = vld [vmem:[%s2465_s13] ss:$0 sm:$0xff]  ;;  %s2118_s13 = scalar_lea.vmem %s1484_s30, 128 }
 0x1ac   :  { %924 = vmatprep.subr.bf16.mxu0 %v1858_v19  ;;  %965 = vmatprep.subr.bf16.mxu1 %v1861_v20  ;;  %v433_v20 = vld [vmem:[%s2461_s9] sm:$0xf]  ;;  %p2119_p2 = scmp.ne.s32.totalorder %s1484_s30, %s2118_s13  ;;  %p2124_p4 = scmp.lt.s32.totalorder %s2118_s13, %s2118_s13 }
 0x1ad   :  { %v437_v18 = vsub.s32 0, %v436_v17  ;;  %v445_v19 = vsub.s32 2, %v436_v17 }
 0x1ae   :  { %p2125_p5 = por %p2124_p4, %p2123_p3 }
 0x1af   :  { %925 = vmatpush1.bf16.msra.mxu0 %v1856_v21  ;;  %966 = vmatpush1.bf16.msra.mxu1 %v1859_v22  ;;  %v441_v21 = vsub.s32 1, %v436_v17  ;;  %v449_v22 = vsub.s32 3, %v436_v17 }
 0x1b0   :  { %926 = vmatprep.subr.bf16.mxu0 %v1864_v23  ;;  %967 = vmatprep.subr.bf16.mxu1 %v1867_v24  ;;  %v734_v23 = vld [vmem:[%s2463_s11] sm:$0xf]  ;;  %v438_v24 = vrot.slane %v433_v20, %v437_v18  ;;  %p2126_p6 = pnand %p2125_p5, %p2119_p2 }
 0x1b1   :  { %v450_v27 = vrot.slane %v433_v20, %v449_v22 }
 0x1b3   :  { %927 = vmatpush1.bf16.msra.mxu0 %v1862_v25  ;;  %968 = vmatpush1.bf16.msra.mxu1 %v1865_v26  ;;  %v446_v25 = vrot.slane %v433_v20, %v445_v19  ;;  %v442_v26 = vrot.slane %v433_v20, %v441_v21 }
 0x1b4   :  { %928 = vmatprep.subr.bf16.mxu0 %v1870_v28  ;;  %969 = vmatprep.subr.bf16.mxu1 %v1873_v29  ;;  %v739_v28 = vrot.slane %v734_v23, %v437_v18  ;;  %v747_v29 = vrot.slane %v734_v23, %v445_v19 }
 0x1b7   :  { %929 = vmatpush1.bf16.msra.mxu0 %v1868_v31  ;;  %970 = vmatpush1.bf16.msra.mxu1 %v1871_v32  ;;  %v1007_v31 = vstv %s2473_s28  ;;  %v1005_v32 = vld [vmem:[#allocation8 + $0x10] sm:$0xff] }
 0x1b8   :  { %930 = vmatprep.subr.bf16.mxu0 %v1876_v33  ;;  %971 = vmatprep.subr.bf16.mxu1 %v1879_v34  ;;  %v743_v33 = vrot.slane %v734_v23, %v441_v21  ;;  %v751_v34 = vrot.slane %v734_v23, %v449_v22  ;;  %vm1008_vm1 = vcmp.lt.f32.partialorder %v1003_v30, %v1007_v31 }
 0x1b9   :  { %vm1010_vm2 = vcmp.lt.f32.partialorder %v1005_v32, %v1007_v31 }
 0x1bb   :  { %931 = vmatpush1.bf16.msra.mxu0 %v1874_v36  ;;  %972 = vmatpush1.bf16.msra.mxu1 %v1877_v37  ;;  %v1004_v37 = vld [vmem:[#allocation8 + $0x8] sm:$0xff] }
 0x1bc   :  { %1638 = vmatprep.subr.bf16.mxu0 %v1880_v39  ;;  %1660 = vmatprep.subr.bf16.mxu1 %v1881_v40  ;;  %vm1009_vm3 = vcmp.lt.f32.partialorder %v1004_v37, %v1007_v31 }
 0x1be   :  { %949 = vmatmul.mubr.bf16.vlgmr.msra.gmra.mrb[8].mxu0 %v701_v38  ;;  %990 = vmatmul.mubr.bf16.vlgmr.msra.gmra.mrb[8].mxu1 %v701_v38  ;;  %v1006_v38 = vld [vmem:[#allocation8 + $0x18] sm:$0xff] }
 0x1bf   :  { %1639 = vmatpush3.bf16.msra.mxu0 %v1882_v41  ;;  %1661 = vmatpush3.bf16.msra.mxu1 %v1883_v42  ;;  %vm1011_vm4 = vcmp.lt.f32.partialorder %v1006_v38, %v1007_v31 }
 0x1c0   :  { %1640 = vmatprep.subr.bf16.mxu0 %v1884_v43  ;;  %1662 = vmatprep.subr.bf16.mxu1 %v1885_v44 }
 0x1c3   :  { %1641 = vmatpush3.bf16.msra.mxu0 %v1886_v45  ;;  %1663 = vmatpush3.bf16.msra.mxu1 %v1887_v46 }
 0x1c4   :  { %1642 = vmatprep.subr.bf16.mxu0 %v1888_v47  ;;  %1664 = vmatprep.subr.bf16.mxu1 %v1889_v48 }
 0x1c7   :  { %1643 = vmatpush3.bf16.msra.mxu0 %v1890_v49  ;;  %1665 = vmatpush3.bf16.msra.mxu1 %v1891_v50 }
 0x1c8   :  { %1644 = vmatprep.subr.bf16.mxu0 %v1892_v51  ;;  %1666 = vmatprep.subr.bf16.mxu1 %v1893_v52 }
 0x1cb   :  { %1645 = vmatpush3.bf16.msra.mxu0 %v1894_v53  ;;  %1667 = vmatpush3.bf16.msra.mxu1 %v1895_v54 }
 0x1cc   :  { %1646 = vmatprep.subr.bf16.mxu0 %v1896_v55  ;;  %1668 = vmatprep.subr.bf16.mxu1 %v1897_v56 }
 0x1cf   :  { %1647 = vmatpush3.bf16.msra.mxu0 %v1898_v57  ;;  %1669 = vmatpush3.bf16.msra.mxu1 %v1899_v58 }
 0x1d0   :  { %1648 = vmatprep.subr.bf16.mxu0 %v1900_v59  ;;  %1670 = vmatprep.subr.bf16.mxu1 %v1901_v60 }
 0x1d3   :  { %1649 = vmatpush3.bf16.msra.mxu0 %v1902_v61  ;;  %1671 = vmatpush3.bf16.msra.mxu1 %v1903_v62 }
 0x1d4   :  { %1650 = vmatprep.subr.bf16.mxu0 %v1904_v63  ;;  %1672 = vmatprep.subr.bf16.mxu1 %v1905_v1 }
 0x1d7   :  { %1651 = vmatpush3.bf16.msra.mxu0 %v1906_v2  ;;  %1673 = vmatpush3.bf16.msra.mxu1 %v1907_v3 }
 0x1d8   :  { %1652 = vmatprep.subr.bf16.mxu0 %v1908_v4  ;;  %1674 = vmatprep.subr.bf16.mxu1 %v1909_v5  ;;  %v1912_v4 = vld [vmem:[#allocation17] sm:$0xff]  }
 0x1db   :  { %1653 = vmatpush3.bf16.msra.mxu0 %v1910_v6  ;;  %1675 = vmatpush3.bf16.msra.mxu1 %v1911_v7  ;;  %v1913_v7 = vld [vmem:[#allocation17 + $0x8] sm:$0xff]  }
 0x1dc   :  { %1731 = vmatprep.subr.bf16.mxu0 %v2165_v0 }
 0x271   :  { %v649_v8 = vpop.f32.mrb[4].mxu0  ;;  %v690_v9 = vpop.f32.mrb[4].mxu1 }
 0x272   :  { %v651_v10 = vpop.f32.mrb[5].mxu0  ;;  %v692_v11 = vpop.f32.mrb[5].mxu1  ;;  %v650_v35 = vadd.f32 %v649_v8, %v438_v24  ;;  %v691_v36 = vadd.f32 %v690_v9, %v446_v25  ;;  %v1914_v8 = vld [vmem:[#allocation17 + $0x10] sm:$0xff]   ;;  %v1915_v9 = vld [vmem:[#allocation17 + $0x18] sm:$0xff]  }
 0x273   :  { %v653_v12 = vpop.f32.mrb[6].mxu0  ;;  %v694_v13 = vpop.f32.mrb[6].mxu1  ;;  %v652_v39 = vadd.f32 %v651_v10, %v442_v26  ;;  %v693_v40 = vadd.f32 %v692_v11, %v450_v27  ;;  %v1916_v10 = vld [vmem:[#allocation17 + $0x20] sm:$0xff]   ;;  %v1917_v11 = vld [vmem:[#allocation17 + $0x28] sm:$0xff]  }
 0x274   :  { %v654_v14 = vpop.f32.mrb[7].mxu0  ;;  %v695_v15 = vpop.f32.mrb[7].mxu1  ;;  %v697_v51 = vmax.f32 %v650_v35, 0.0  ;;  %v699_v52 = vmax.f32 %v691_v36, 0.0  ;;  %v1918_v12 = vld [vmem:[#allocation17 + $0x30] sm:$0xff]   ;;  %v1919_v13 = vld [vmem:[#allocation17 + $0x38] sm:$0xff]  }
 0x275   :  { %v698_v57 = vmax.f32 %v652_v39, 0.0  ;;  %v700_v58 = vmax.f32 %v693_v40, 0.0 }
 0x291   :  { %v950_v41 = vpop.f32.mrb[8].mxu0  ;;  %v991_v42 = vpop.f32.mrb[8].mxu1 }
 0x292   :  { %v951_v43 = vadd.f32 %v950_v41, %v739_v28  ;;  %v992_v44 = vadd.f32 %v991_v42, %v747_v29  ;;  %v952_v45 = vpop.f32.mrb[9].mxu0  ;;  %v993_v46 = vpop.f32.mrb[9].mxu1  ;;  %v1611_v28 = vld [vmem:[%s2467_s15] ss:$0 sm:$0xff] }
 0x293   :  { %v953_v47 = vadd.f32 %v952_v45, %v743_v33  ;;  %v994_v48 = vadd.f32 %v993_v46, %v751_v34  ;;  %v954_v49 = vpop.f32.mrb[10].mxu0  ;;  %v995_v50 = vpop.f32.mrb[10].mxu1 }
 0x294   :  { %v998_v53 = vmax.f32 %v951_v43, 0.0  ;;  %v1000_v54 = vmax.f32 %v992_v44, 0.0  ;;  %v955_v55 = vpop.f32.mrb[11].mxu0  ;;  %v996_v56 = vpop.f32.mrb[11].mxu1 }
 0x295   :  { %v999_v59 = vmax.f32 %v953_v47, 0.0  ;;  %v1001_v60 = vmax.f32 %v994_v48, 0.0 }
 0x296   :  { %v1012_v61 = vsel %vm1008_vm1, %v697_v51, %v998_v53  ;;  %v1014_v62 = vsel %vm1010_vm2, %v699_v52, %v1000_v54 }
 0x297   :  { %v1013_v63 = vsel %vm1009_vm3, %v698_v57, %v999_v59  ;;  %v1015_v1 = vsel %vm1011_vm4, %v700_v58, %v1001_v60  ;;  %v1016_v5 = vpack.c.bf16 %v1012_v61, %v1012_v61  ;;  %v1018_v6 = vpack.c.bf16 %v1014_v62, %v1014_v62 }
 0x298   :  { %v1017_v2 = vpack.c.bf16 %v1013_v63, %v1013_v63  ;;  %v1019_v3 = vpack.c.bf16 %v1015_v1, %v1015_v1 }
 0x29a   :  { %1315 = vmatprep.mubr.bf16.mxu0 %v1017_v2  ;;  %1355 = vmatprep.mubr.bf16.mxu1 %v1019_v3 }
 0x29b   :  { %1316 = vmatmul.mubr.bf16.vlgmr.msra.gmra.mrb[12].mxu0 %v1016_v5  ;;  %1356 = vmatmul.mubr.bf16.vlgmr.msra.gmra.mrb[12].mxu1 %v1018_v6 }
 0x29c   :  { %1732 = vmatpush3.bf16.msra.mxu0 %v1912_v4  ;;  %1747 = vmatprep.mubr.msk.bf16.mxu0 %vm2166_vm0, %v2165_v0 }
 0x29d   :  { %1733 = vmatprep.subr.bf16.mxu0 %v2165_v0 }
 0x2a0   :  { %1734 = vmatpush3.bf16.msra.mxu0 %v1913_v7 }
 0x2a1   :  { %1735 = vmatprep.subr.bf16.mxu0 %v2165_v0 }
 0x2a4   :  { %1736 = vmatpush3.bf16.msra.mxu0 %v1914_v8 }
 0x2a5   :  { %1737 = vmatprep.subr.bf16.mxu0 %v2165_v0 }
 0x2a8   :  { %1738 = vmatpush3.bf16.msra.mxu0 %v1915_v9 }
 0x2a9   :  { %1739 = vmatprep.subr.bf16.mxu0 %v2165_v0 }
 0x2ac   :  { %1740 = vmatpush3.bf16.msra.mxu0 %v1916_v10 }
 0x2ad   :  { %1741 = vmatprep.subr.bf16.mxu0 %v2165_v0 }
 0x2b0   :  { %1742 = vmatpush3.bf16.msra.mxu0 %v1917_v11 }
 0x2b1   :  { %1743 = vmatprep.subr.bf16.mxu0 %v2165_v0 }
 0x2b4   :  { %1744 = vmatpush3.bf16.msra.mxu0 %v1918_v12 }
 0x2b5   :  { %1745 = vmatprep.subr.bf16.mxu0 %v2165_v0 }
 0x2b8   :  { %1746 = vmatpush3.bf16.msra.mxu0 %v1919_v13 }
 0x36e   :  { %v1654_v14 = vpop.f32.mrb[12].mxu0  ;;  %v1676_v15 = vpop.f32.mrb[12].mxu1 }
 0x36f   :  { %v1655_v17 = vpop.f32.mrb[13].mxu0  ;;  %v1677_v18 = vpop.f32.mrb[13].mxu1 }
 0x370   :  { %v1656_v19 = vadd.f32 %v1655_v17, %v1654_v14  ;;  %v1678_v20 = vadd.f32 %v1677_v18, %v1676_v15  ;;  %v1657_v21 = vpop.f32.mrb[14].mxu0  ;;  %v1679_v22 = vpop.f32.mrb[14].mxu1 }
 0x371   :  { %v1658_v23 = vpop.f32.mrb[15].mxu0  ;;  %v1680_v24 = vpop.f32.mrb[15].mxu1 }
 0x372   :  { %v1318_v25 = vadd.f32 %v1656_v19, %v1578_v16 }
 0x374   :  { %v1358_v26 = vadd.f32 %v1678_v20, %v1318_v25 }
 0x376   :  { %v1363_v27 = vmax.f32 %v1358_v26, 0.0 }
 0x378   :  { %v1364_v0 = vpack.c.bf16 %v1363_v27, %v1363_v27 }
 0x37a   :  { %1748 = vmatmul.mubr.bf16.vlgmr.msra.gmra.mrb[16].mxu0 %v1364_v0 }
 0x44d   :  { %v1470_v29 = vpop.f32.mrb[16].mxu0 }
 0x44e   :  { %v1471_v30 = vadd.f32 %v1611_v28, %v1470_v29  ;;  %v1749_v31 = vpop.f32.mrb[17].mxu0 }
 0x44f   :  { %v1473_v32 = vpop.f32.mrb[18].mxu0 }
 0x450   :  { %1476 = vst [vmem:[#allocation18] sm:$0xff] %v1471_v30  ;;  %v1750_v33 = vpop.f32.mrb[19].mxu0 }
 0x451   :  { %2129 = shalt.err (!%p2126_p6)
}
 0x452   :  { %s2130_s15 = scalar_lea.hbm %s2468_s16, 128 }
 0x453   :  { %p2131_p7 = scmp.ne.s32.totalorder %s2468_s16, %s2130_s15  ;;  %p2134_p8 = scmp.lt.u32.totalorder %s2130_s15, %s2468_s16 }
 0x455   :  { %p2136_p9 = pnand %p2134_p8, %p2131_p7 }
 0x457   :  { %2139 = shalt.err (!%p2136_p9)
}
 0x458   :  { %1486 = dma.vmem_to_hbm [thread:$0]  %s1484_s30, 128, %s2468_s16, [#allocation5]  }
 0x459   :  { %2150 = dma.done.wait [#allocation5], 128  }
 0x45a   :  { %2151 = vsyncadd [#allocation5], 4294967168 }
 0x45b   :  { %1490 = vsyncpa [#allocation4], 1 }
 0x45c   :  { %1491 = vsyncpa [#allocation7], 1 }
 0x45d   :  { %1492 = vsyncpa [#allocation10], 1 }
 0x45e   :  { %1493 = vsyncpa [#allocation13], 1 }
 0x45f   :  { %1494 = vsyncpa [#allocation16], 1 }
 0x460   :  { %1495 = vsyncpa [#allocation5], 1 }

</bundles_post_ra>
